<compile_context>
chip_gen: v7x
topology: tpu7x:2x2x1
jax: 0.10.0
libtpu: 0.0.40
codegen_flags: <defaults>
</compile_context>

<pallas_src>
import functools
import math

import jax
import jax.numpy as jnp
from jax import lax
from jax.experimental import pallas as pl
from jax.experimental.pallas import tpu as pltpu


def _round_up(x, m):
    return ((x + m - 1) // m) * m


def _projection_head_kernel(inv_p, x_ref, w1_ref, b1_ref, w2_ref, b2_ref,
                            gamma_ref, beta_ref, o_ref):
    # projected = x @ W1 + b1   (MXU matmul, f32 accumulation; native-dtype feed)
    projected = jnp.dot(x_ref[...], w1_ref[...],
                        preferred_element_type=jnp.float32) + b1_ref[...]

    # exact GELU (PyTorch nn.GELU default): 0.5 * x * (1 + erf(x / sqrt(2)))
    h = 0.5 * projected * (1.0 + lax.erf(projected * (1.0 / math.sqrt(2.0))))

    # fc: h @ W2 + b2  (downcast h to the weight dtype so bf16 weights stay bf16)
    y = jnp.dot(h.astype(w2_ref.dtype), w2_ref[...],
                preferred_element_type=jnp.float32) + b2_ref[...]

    # TODO(synk): dropout is identity here (p=0.0 default / eval mode).

    # residual (padded lanes remain exactly 0 by construction)
    y = y + projected

    # LayerNorm over the real P features, single pass:
    #   mean = sum(y)/P ; var = sum(y^2)/P - mean^2   (biased, PyTorch-style)
    s1 = jnp.sum(y, axis=-1, keepdims=True)
    s2 = jnp.sum(y * y, axis=-1, keepdims=True)
    mean = s1 * inv_p
    var = s2 * inv_p - mean * mean
    norm = (y - mean) * lax.rsqrt(var + 1e-5)

    # padded gamma/beta lanes are 0, so padded output lanes stay 0
    o_ref[...] = (norm * gamma_ref[...] + beta_ref[...]).astype(o_ref.dtype)


def projection_head(x, w1, b1, w2, b2, gamma, beta, *, tb=None):
    """x: [B, E]; w1: [E, P]; w2: [P, P]; b/gamma/beta: [P] or [1, P]. Returns [B, P]."""
    B, E = x.shape
    P = w1.shape[1]

    # Lane-dense padding of the feature dims.
    E_pad = _round_up(E, 128)
    P_pad = _round_up(P, 128)

    # Batch tile: fill the MXU M-dim, capped so double-buffered x/out tiles plus
    # the resident weights comfortably fit VMEM (works on v5e/v6e/v7x budgets).
    if tb is None:
        itemsize = jnp.dtype(x.dtype).itemsize
        weights_bytes = (E_pad * P_pad + P_pad * P_pad + 4 * P_pad) * jnp.dtype(w1.dtype).itemsize
        budget = 24 * 1024 * 1024 - weights_bytes
        per_row = 2 * (E_pad + P_pad) * itemsize + 4 * P_pad * 4  # dbuf io + f32 temps
        tb = max(8, min(1024, budget // max(per_row, 1), _round_up(B, 8)))
        tb = _round_up(tb, 8)
    tb = max(8, _round_up(tb, 8))
    B_pad = _round_up(B, tb)

    def row(v):
        return jnp.reshape(v, (1, -1))

    xp = jnp.pad(x, ((0, B_pad - B), (0, E_pad - E)))
    w1p = jnp.pad(w1, ((0, E_pad - E), (0, P_pad - P)))
    w2p = jnp.pad(w2, ((0, P_pad - P), (0, P_pad - P)))
    b1p = jnp.pad(row(b1), ((0, 0), (0, P_pad - P)))
    b2p = jnp.pad(row(b2), ((0, 0), (0, P_pad - P)))
    gammap = jnp.pad(row(gamma), ((0, 0), (0, P_pad - P)))
    betap = jnp.pad(row(beta), ((0, 0), (0, P_pad - P)))

    # VMEM budget: double-buffered x/out tiles + resident weights/params + slack.
    isz = xp.dtype.itemsize
    wsz = w1p.dtype.itemsize
    est = (2 * tb * E_pad * isz + 2 * tb * P_pad * isz
           + (E_pad * P_pad + P_pad * P_pad + 4 * P_pad) * wsz
           + 4 * tb * P_pad * 4)
    vmem_limit = int(min(64 * 1024 * 1024, max(2 * est, 16 * 1024 * 1024)))

    const_map = lambda i: (0, 0)   # weights / params: same block every step (no re-DMA)
    batch_map = lambda i: (i, 0)

    kernel = functools.partial(_projection_head_kernel, 1.0 / float(P))

    n_steps = B_pad // tb
    cost = pl.CostEstimate(
        flops=2 * B_pad * (E_pad * P_pad + P_pad * P_pad) + 10 * B_pad * P_pad,
        transcendentals=2 * B_pad * P_pad,  # erf + rsqrt
        bytes_accessed=(B_pad * (E_pad + P_pad) * isz
                        + (E_pad * P_pad + P_pad * P_pad + 4 * P_pad) * wsz),
    )

    out = pl.pallas_call(
        kernel,
        out_shape=jax.ShapeDtypeStruct((B_pad, P_pad), x.dtype),
        grid_spec=pltpu.PrefetchScalarGridSpec(
            num_scalar_prefetch=0,
            grid=(n_steps,),
            in_specs=[
                pl.BlockSpec((tb, E_pad), batch_map),     # x tile (pipelined)
                pl.BlockSpec((E_pad, P_pad), const_map),  # w1 (resident)
                pl.BlockSpec((1, P_pad), const_map),      # b1
                pl.BlockSpec((P_pad, P_pad), const_map),  # w2 (resident)
                pl.BlockSpec((1, P_pad), const_map),      # b2
                pl.BlockSpec((1, P_pad), const_map),      # gamma
                pl.BlockSpec((1, P_pad), const_map),      # beta
            ],
            out_specs=pl.BlockSpec((tb, P_pad), batch_map),
        ),
        compiler_params=pltpu.CompilerParams(
            dimension_semantics=("parallel",),
            vmem_limit_bytes=vmem_limit,
        ),
        cost_estimate=cost,
    )(xp, w1p, b1p, w2p, b2p, gammap, betap)

    return out[:B, :P]


def _reference(x, w1, b1, w2, b2, gamma, beta):
    projected = x.astype(jnp.float32) @ w1 + b1.reshape(1, -1)
    h = jax.nn.gelu(projected, approximate=False)
    y = h @ w2 + b2.reshape(1, -1)
    y = y + projected
    mean = jnp.mean(y, axis=-1, keepdims=True)
    var = jnp.mean((y - mean) ** 2, axis=-1, keepdims=True)
    return (y - mean) / jnp.sqrt(var + 1e-5) * gamma.reshape(1, -1) + beta.reshape(1, -1)


if __name__ == "__main__":
    B = 100         # batch (e.g. number of spots / tokens) -> exercises tiling + padding
    E = 32          # embedding_dim
    P = 32          # projection_dim

    key = jax.random.PRNGKey(0)
    kx, k1, kb1, k2, kb2 = jax.random.split(key, 5)

    x = jax.random.normal(kx, (B, E), dtype=jnp.float32)

    # Deterministic synthetic parameters (shapes from nn.Linear / nn.LayerNorm,
    # weights pre-transposed: w1 [E, P], w2 [P, P]).
    w1 = jax.random.normal(k1, (E, P), dtype=jnp.float32) * (1.0 / math.sqrt(E))
    b1 = jax.random.normal(kb1, (P,), dtype=jnp.float32) * 0.01
    w2 = jax.random.normal(k2, (P, P), dtype=jnp.float32) * (1.0 / math.sqrt(P))
    b2 = jax.random.normal(kb2, (P,), dtype=jnp.float32) * 0.01
    gamma = jnp.ones((P,), dtype=jnp.float32)
    beta = jnp.zeros((P,), dtype=jnp.float32)

    # tb=32 -> 4 grid steps over the (padded) batch, exercising the pipeline.
    out = projection_head(x, w1, b1, w2, b2, gamma, beta, tb=32)
    out = jax.block_until_ready(out)

    ref = _reference(x, w1, b1, w2, b2, gamma, beta)
    assert out.shape == (B, P)
    assert jnp.allclose(out, ref, atol=1e-4, rtol=1e-4), "mismatch vs reference"

    # Also exercise the auto tile-size path (single big tile).
    out2 = jax.block_until_ready(projection_head(x, w1, b1, w2, b2, gamma, beta))
    assert jnp.allclose(out2, ref, atol=1e-4, rtol=1e-4), "mismatch vs reference (auto tb)"

    print("KERNEL_OK")
</pallas_src>

<mosaic_0001>
module attributes {stable_mosaic.version = 11 : i64} {
  func.func @_projection_head_kernel(%arg0: i32, %arg1: memref<32x128xf32, #tpu.memory_space<vmem>>, %arg2: memref<128x128xf32, #tpu.memory_space<vmem>>, %arg3: memref<1x128xf32, #tpu.memory_space<vmem>>, %arg4: memref<128x128xf32, #tpu.memory_space<vmem>>, %arg5: memref<1x128xf32, #tpu.memory_space<vmem>>, %arg6: memref<1x128xf32, #tpu.memory_space<vmem>>, %arg7: memref<1x128xf32, #tpu.memory_space<vmem>>, %arg8: memref<32x128xf32, #tpu.memory_space<vmem>>) attributes {dimension_semantics = [#tpu.dimension_semantics<parallel>], iteration_bounds = array<i64: 4>, scalar_prefetch = 0 : i64, scratch_operands = 0 : i64, tpu.core_type = #tpu.core_type<tc>, window_params = [{transform_indices = @transform_0, window_bounds = array<i64: 32, 128>}, {pipeline_mode = #tpu.pipeline_mode<synchronous>, transform_indices = @transform_1, window_bounds = array<i64: 128, 128>}, {pipeline_mode = #tpu.pipeline_mode<synchronous>, transform_indices = @transform_2, window_bounds = array<i64: 1, 128>}, {pipeline_mode = #tpu.pipeline_mode<synchronous>, transform_indices = @transform_3, window_bounds = array<i64: 128, 128>}, {pipeline_mode = #tpu.pipeline_mode<synchronous>, transform_indices = @transform_4, window_bounds = array<i64: 1, 128>}, {pipeline_mode = #tpu.pipeline_mode<synchronous>, transform_indices = @transform_5, window_bounds = array<i64: 1, 128>}, {pipeline_mode = #tpu.pipeline_mode<synchronous>, transform_indices = @transform_6, window_bounds = array<i64: 1, 128>}, {transform_indices = @transform_7, window_bounds = array<i64: 32, 128>}]} {
    %c0 = arith.constant 0 : index
    %c0_0 = arith.constant 0 : index
    %0 = vector.load %arg1[%c0, %c0_0] : memref<32x128xf32, #tpu.memory_space<vmem>>, vector<32x128xf32>
    %c0_1 = arith.constant 0 : index
    %c0_2 = arith.constant 0 : index
    %1 = vector.load %arg2[%c0_1, %c0_2] : memref<128x128xf32, #tpu.memory_space<vmem>>, vector<128x128xf32>
    %cst = arith.constant dense<0.000000e+00> : vector<32x128xf32>
    %2 = tpu.matmul %0, %1, %cst {dimension_numbers = #tpu.dot_dimension_numbers<[1], [0], [0], [1], [0, 0, 1, 1], [], []>} : vector<32x128xf32>, vector<128x128xf32>, vector<32x128xf32> -> vector<32x128xf32>
    %c0_3 = arith.constant 0 : index
    %c0_4 = arith.constant 0 : index
    %3 = vector.load %arg3[%c0_3, %c0_4] : memref<1x128xf32, #tpu.memory_space<vmem>>, vector<1x128xf32>
    %4 = vector.broadcast %3 : vector<1x128xf32> to vector<32x128xf32>
    %5 = arith.addf %2, %4 : vector<32x128xf32>
    %cst_5 = arith.constant 5.000000e-01 : f32
    %6 = vector.broadcast %cst_5 : f32 to vector<32x128xf32>
    %7 = arith.mulf %6, %5 : vector<32x128xf32>
    %cst_6 = arith.constant 0.707106769 : f32
    %8 = vector.broadcast %cst_6 : f32 to vector<32x128xf32>
    %9 = arith.mulf %5, %8 : vector<32x128xf32>
    %10 = math.erf %9 : vector<32x128xf32>
    %cst_7 = arith.constant 1.000000e+00 : f32
    %11 = vector.broadcast %cst_7 : f32 to vector<32x128xf32>
    %12 = arith.addf %11, %10 : vector<32x128xf32>
    %13 = arith.mulf %7, %12 : vector<32x128xf32>
    %c0_8 = arith.constant 0 : index
    %c0_9 = arith.constant 0 : index
    %14 = vector.load %arg4[%c0_8, %c0_9] : memref<128x128xf32, #tpu.memory_space<vmem>>, vector<128x128xf32>
    %cst_10 = arith.constant dense<0.000000e+00> : vector<32x128xf32>
    %15 = tpu.matmul %13, %14, %cst_10 {dimension_numbers = #tpu.dot_dimension_numbers<[1], [0], [0], [1], [0, 0, 1, 1], [], []>} : vector<32x128xf32>, vector<128x128xf32>, vector<32x128xf32> -> vector<32x128xf32>
    %c0_11 = arith.constant 0 : index
    %c0_12 = arith.constant 0 : index
    %16 = vector.load %arg5[%c0_11, %c0_12] : memref<1x128xf32, #tpu.memory_space<vmem>>, vector<1x128xf32>
    %17 = vector.broadcast %16 : vector<1x128xf32> to vector<32x128xf32>
    %18 = arith.addf %15, %17 : vector<32x128xf32>
    %19 = arith.addf %18, %5 : vector<32x128xf32>
    %cst_13 = arith.constant dense<0.000000e+00> : vector<32xf32>
    %20 = vector.multi_reduction <add>, %19, %cst_13 [1] : vector<32x128xf32> to vector<32xf32>
    %21 = vector.shape_cast %20 : vector<32xf32> to vector<32x1xf32>
    %22 = arith.mulf %19, %19 : vector<32x128xf32>
    %cst_14 = arith.constant dense<0.000000e+00> : vector<32xf32>
    %23 = vector.multi_reduction <add>, %22, %cst_14 [1] : vector<32x128xf32> to vector<32xf32>
    %24 = vector.shape_cast %23 : vector<32xf32> to vector<32x1xf32>
    %cst_15 = arith.constant 3.125000e-02 : f32
    %25 = vector.broadcast %cst_15 : f32 to vector<32x1xf32>
    %26 = arith.mulf %21, %25 : vector<32x1xf32>
    %cst_16 = arith.constant 3.125000e-02 : f32
    %27 = vector.broadcast %cst_16 : f32 to vector<32x1xf32>
    %28 = arith.mulf %24, %27 : vector<32x1xf32>
    %29 = arith.mulf %26, %26 : vector<32x1xf32>
    %30 = arith.subf %28, %29 : vector<32x1xf32>
    %31 = vector.broadcast %26 : vector<32x1xf32> to vector<32x128xf32>
    %32 = arith.subf %19, %31 : vector<32x128xf32>
    %cst_17 = arith.constant 9.99999974E-6 : f32
    %33 = vector.broadcast %cst_17 : f32 to vector<32x1xf32>
    %34 = arith.addf %30, %33 : vector<32x1xf32>
    %35 = math.rsqrt %34 : vector<32x1xf32>
    %36 = vector.broadcast %35 : vector<32x1xf32> to vector<32x128xf32>
    %37 = arith.mulf %32, %36 : vector<32x128xf32>
    %c0_18 = arith.constant 0 : index
    %c0_19 = arith.constant 0 : index
    %38 = vector.load %arg6[%c0_18, %c0_19] : memref<1x128xf32, #tpu.memory_space<vmem>>, vector<1x128xf32>
    %39 = vector.broadcast %38 : vector<1x128xf32> to vector<32x128xf32>
    %40 = arith.mulf %37, %39 : vector<32x128xf32>
    %c0_20 = arith.constant 0 : index
    %c0_21 = arith.constant 0 : index
    %41 = vector.load %arg7[%c0_20, %c0_21] : memref<1x128xf32, #tpu.memory_space<vmem>>, vector<1x128xf32>
    %42 = vector.broadcast %41 : vector<1x128xf32> to vector<32x128xf32>
    %43 = arith.addf %40, %42 : vector<32x128xf32>
    %c0_22 = arith.constant 0 : index
    %c0_23 = arith.constant 0 : index
    %44 = vector.load %arg8[%c0_22, %c0_23] : memref<32x128xf32, #tpu.memory_space<vmem>>, vector<32x128xf32>
    tpu.vector_store %arg8[%c0_22, %c0_23], %43 {strides = array<i32>} : memref<32x128xf32, #tpu.memory_space<vmem>>, vector<32x128xf32>,
    return
  }
  func.func @transform_0(%arg0: i32) -> (i32, i32) {
    %c0_i32 = arith.constant 0 : i32
    %c0_i32_0 = arith.constant 0 : i32
    return %arg0, %c0_i32 : i32, i32
  }
  func.func @transform_1(%arg0: i32) -> (i32, i32) {
    %c0_i32 = arith.constant 0 : i32
    %c0_i32_0 = arith.constant 0 : i32
    %c0_i32_1 = arith.constant 0 : i32
    return %c0_i32, %c0_i32_0 : i32, i32
  }
  func.func @transform_2(%arg0: i32) -> (i32, i32) {
    %c0_i32 = arith.constant 0 : i32
    %c0_i32_0 = arith.constant 0 : i32
    %c0_i32_1 = arith.constant 0 : i32
    return %c0_i32, %c0_i32_0 : i32, i32
  }
  func.func @transform_3(%arg0: i32) -> (i32, i32) {
    %c0_i32 = arith.constant 0 : i32
    %c0_i32_0 = arith.constant 0 : i32
    %c0_i32_1 = arith.constant 0 : i32
    return %c0_i32, %c0_i32_0 : i32, i32
  }
  func.func @transform_4(%arg0: i32) -> (i32, i32) {
    %c0_i32 = arith.constant 0 : i32
    %c0_i32_0 = arith.constant 0 : i32
    %c0_i32_1 = arith.constant 0 : i32
    return %c0_i32, %c0_i32_0 : i32, i32
  }
  func.func @transform_5(%arg0: i32) -> (i32, i32) {
    %c0_i32 = arith.constant 0 : i32
    %c0_i32_0 = arith.constant 0 : i32
    %c0_i32_1 = arith.constant 0 : i32
    return %c0_i32, %c0_i32_0 : i32, i32
  }
  func.func @transform_6(%arg0: i32) -> (i32, i32) {
    %c0_i32 = arith.constant 0 : i32
    %c0_i32_0 = arith.constant 0 : i32
    %c0_i32_1 = arith.constant 0 : i32
    return %c0_i32, %c0_i32_0 : i32, i32
  }
  func.func @transform_7(%arg0: i32) -> (i32, i32) {
    %c0_i32 = arith.constant 0 : i32
    %c0_i32_0 = arith.constant 0 : i32
    return %arg0, %c0_i32 : i32, i32
  }
}

</mosaic_0001>

<bundles_post_ra>
// kernel: tpu_custom_call.1
= control target key start
LH: loop header
LB: loop body
LE: loop exit
PB: predicated region body
PF: predicated region fallthrough
CT: control target
= control target key end

     0   :  { %12 = vsyncpa [#allocation3], 0  ;;  %s1515_s0 = inlined_call_operand.hbm [shape: f32[128,128], index: 0, kind: input, shape index: {}]   ;;  %s1516_s1 = inlined_call_operand.hbm [shape: f32[128,128], index: 1, kind: input, shape index: {}]   ;;  %s1517_s2 = inlined_call_operand.vmem [shape: f32[1,128], index: 2, kind: input, shape index: {}]   ;;  %s1518_s3 = inlined_call_operand.hbm [shape: f32[128,128], index: 3, kind: input, shape index: {}]   ;;  %s1519_s4 = inlined_call_operand.vmem [shape: f32[1,128], index: 4, kind: input, shape index: {}]   ;;  %s1520_s5 = inlined_call_operand.vmem [shape: f32[1,128], index: 5, kind: input, shape index: {}]   ;;  %s1521_s6 = inlined_call_operand.vmem [shape: f32[1,128], index: 6, kind: input, shape index: {}]   ;;  %s1522_s7 = inlined_call_operand.hbm [shape: f32[128,128], index: 7, kind: output, shape index: {}]  }
   0x1   :  { %14 = vsyncpa [#allocation3 + $0x1], 0 }
   0x2   :  { %15 = vsyncpa [#allocation6], 0 }
   0x3   :  { %16 = vsyncpa [#allocation4], 0 }
   0x4   :  { %18 = vsyncpa [#allocation4 + $0x1], 0  ;;  %s1253_s24 = smov 0   ;;  %s1255_s25 = smov 0  }
   0x5   :  { %s1257_s26 = smov 0   ;;  %s1259_s27 = smov 0  }
   0x6 LB: > { %s1274_s28 = sadd.s32 4294967295, %s1203_s27   ;;  %s756_s29 = sadd.s32 4294967294, %s1203_s27   ;;  %s1203_s27 = sphi %s1259_s27, %s1543_s27   ;;  %s1199_s26 = sphi %s1257_s26, %s1542_s26   ;;  %s1195_s25 = sphi %s1255_s25, %s1541_s25   ;;  %s1191_s24 = sphi %s1253_s24, %s1540_s24  }
   0x7   : > { %p44_p0 = scmp.ne.s32.totalorder %s1195_s25, %s1191_s24  ;;  %p1523_p1 = scmp.eq.s32.totalorder %s1274_s28, 0 }
   0x8   : > { %p200_p3 = scmp.eq.s32.totalorder %s756_s29, 3  ;;  %p757_p5 = scmp.ge.s32.totalorder %s1203_s27, 1 }
   0x9   : > { %p1283_p4 = por %p1523_p1, %p44_p0  ;;  %p207_p7 = scmp.lt.s32.totalorder %s1203_s27, 5 }
   0xa   : > { %p1288_p6 = por %p200_p3, %p44_p0  ;;  %s1205_s10 = smov [#allocation5]  }
   0xb   : > { %s1527_s30 = scalar_select %p1283_p4, 1, 0 }
   0xc   : > { %s1528_s8 = scalar_select %p1288_p6, 1, 0 }
   0xd   : > { %p1293_p8 = pnand %p757_p5, %p207_p7  ;;  %s219_s11 = sshll.u32 %s1205_s10, 4  ;;  %s220_s11 = int_to_ptr.vmem [resolvable:$true] %s219_s11 }
   0xe   : > { %s1206_s13 = smov [#allocation7]   ;;  %s1047_s17 = scalar_lea.hbm %s1516_s1, 2048 }
   0xf   : > { %s1529_s9 = scalar_select %p1293_p8, 1, 0 }
  0x10   : > { %p972_p9 = pneg %p1293_p8  ;;  %s235_s14 = sshll.u32 %s1206_s13, 4  ;;  %s1305_s14 = int_to_ptr.vmem [resolvable:$true] %s235_s14 }
  0x11   : > { %p1048_p11 = scmp.ne.s32.totalorder %s1516_s1, %s1047_s17  ;;  %p1054_p3 = scmp.lt.u32.totalorder %s1047_s17, %s1516_s1 }
  0x12   : > { %p1301_p10 = pnand %p972_p9, %p1523_p1 }
  0x14   : > { %p1049_p12 = pneg %p1301_p10 }
  0x16   : > { %p1050_p13 = pnand %p1049_p12, %p1048_p11 }
  0x18   : > { %p1051_p0 = pneg %p1050_p13 }
  0x1a   : > { %p1056_p5 = pnand %p1054_p3, %p1051_p0 }
  0x1c   : > { %1059 = shalt.err (!%p1056_p5)
}
  0x1d   : > { %s1060_s22 = scalar_lea.vmem %s220_s11, 2048  ;;  %p1068_p2 = scmp.lt.s32.totalorder %s220_s11, %s220_s11 }
  0x1e   : > { %p1061_p7 = scmp.ne.s32.totalorder %s220_s11, %s1060_s22  ;;  %p1069_p6 = scmp.lt.s32.totalorder %s1060_s22, %s1060_s22 }
  0x20   : > { %p1063_p9 = pnand %p1061_p7, %p1049_p12  ;;  %p1070_p4 = por %p1069_p6, %p1068_p2 }
  0x22   : > { %p1064_p1 = pneg %p1063_p9 }
  0x24   : > { %p1071_p8 = pnand %p1070_p4, %p1064_p1 }
  0x26   : > { %1074 = shalt.err (!%p1071_p8)
}
  0x27   : > { %s1526_s23 = smov 128   ;;  %s1208_s29 = smov 8  }
  0x28   : > { %975 = dma.hbm_to_vmem [thread:$0]  (!%p1301_p10), %s1516_s1, 2048, %s220_s11, [#allocation6], %s1526_s23, %s1526_s23, %s1208_s29  }
  0x29   : > { %s1075_s17 = scalar_lea.hbm %s1518_s3, 2048 }
  0x2a   : > { %p1076_p1 = scmp.ne.s32.totalorder %s1518_s3, %s1075_s17  ;;  %p1082_p6 = scmp.lt.u32.totalorder %s1075_s17, %s1518_s3 }
  0x2c   : > { %p1078_p2 = pnand %p1076_p1, %p1049_p12 }
  0x2e   : > { %p1079_p4 = pneg %p1078_p2 }
  0x30   : > { %p1084_p8 = pnand %p1082_p6, %p1079_p4 }
  0x32   : > { %1087 = shalt.err (!%p1084_p8)
}
  0x33   : > { %s1088_s11 = scalar_lea.vmem %s1305_s14, 2048  ;;  %p1096_p3 = scmp.lt.s32.totalorder %s1305_s14, %s1305_s14 }
  0x34   : > { %p1089_p11 = scmp.ne.s32.totalorder %s1305_s14, %s1088_s11  ;;  %p1097_p5 = scmp.lt.s32.totalorder %s1088_s11, %s1088_s11 }
  0x36   : > { %p1091_p13 = pnand %p1089_p11, %p1049_p12  ;;  %p1098_p7 = por %p1097_p5, %p1096_p3 }
  0x38   : > { %p1092_p0 = pneg %p1091_p13 }
  0x3a   : > { %p1099_p9 = pnand %p1098_p7, %p1092_p0 }
  0x3c   : > { %1102 = shalt.err (!%p1099_p9)
}
  0x3d   : > { %978 = dma.hbm_to_vmem [thread:$0]  (!%p1301_p10), %s1518_s3, 2048, %s1305_s14, [#allocation6], %s1526_s23, %s1526_s23, %s1208_s29  }
  0x3e   : > { %s1361_s12 = sadd.s32 1, %s1203_s27   ;;  %s31_s13 = sadd.s32 1, %s1199_s26 }
  0x3f   : > { %s28_s15 = ssub.s32 %s1203_s27, %s1361_s12  ;;  %p38_p12 = scmp.ne.s32.totalorder %s1199_s26, %s1195_s25 }
  0x40   : > { %p29_p1 = scmp.eq.s32.totalorder %s28_s15, 0  ;;  %p39_p2 = scmp.eq.s32.totalorder %s1203_s27, 0 }
  0x41   : > { %p1531_p4 = scmp.eq.s32.totalorder %s1274_s28, 3  ;;  %p989_p8 = scmp.lt.s32.totalorder %s1203_s27, 4 }
  0x42   : > { %s1377_s17 = scalar_select %p29_p1, %s1199_s26, %s31_s13  }
  0x43   : > { %p1371_p6 = por %p1531_p4, %p38_p12  ;;  %p40_p11 = por %p39_p2, %p38_p12 }
  0x44   : > { %s258_s18 = sand.u32 1, %s1199_s26   ;;  %s778_s14 = sshll.u32 %s1203_s27, 9 }
  0x45   : > { %s761_s19 = sshll.u32 %s258_s18, 5  ;;  %s1384_s11 = scalar_lea.hbm %s1515_s0, %s778_s14 }
  0x46   : > { %s262_s22 = scalar_lea.vmem [#allocation2], %s761_s19  ;;  %p1388_p10 = pnand %p989_p8, %p40_p11 }
  0x47   : > { %s269_s10 = sshll.u32 %s262_s22, 4  ;;  %s1392_s15 = scalar_lea.sflag [#allocation3], %s258_s18  ;;  %s1386_s10 = int_to_ptr.vmem [resolvable:$true] %s269_s10 }
  0x48   : > { %s1103_s23 = scalar_lea.hbm %s1384_s11, 512  ;;  %p1105_p0 = pneg %p1388_p10 }
  0x49   : > { %p1104_p13 = scmp.ne.s32.totalorder %s1384_s11, %s1103_s23  ;;  %s1108_s20 = scalar_lea.hbm %s1515_s0, 2048 }
  0x4a   : > { %p1109_p7 = scmp.lt.u32.totalorder %s1384_s11, %s1515_s0  ;;  %p1110_p9 = scmp.lt.u32.totalorder %s1108_s20, %s1103_s23 }
  0x4b   : > { %p1106_p3 = pnand %p1105_p0, %p1104_p13  ;;  %p1112_p1 = scmp.lt.u32.totalorder %s1103_s23, %s1384_s11 }
  0x4c   : > { %p1111_p12 = por %p1110_p9, %p1109_p7 }
  0x4d   : > { %p1107_p5 = pneg %p1106_p3 }
  0x4e   : > { %p1113_p2 = por %p1112_p1, %p1111_p12 }
  0x50   : > { %p1114_p4 = pnand %p1113_p2, %p1107_p5 }
  0x52   : > { %1117 = shalt.err (!%p1114_p4)
}
  0x53   : > { %s1118_s18 = scalar_lea.vmem %s1386_s10, 512  ;;  %s1209_s19 = smov [#allocation2]  }
  0x54   : > { %p1119_p8 = scmp.ne.s32.totalorder %s1386_s10, %s1118_s18  ;;  %s1123_s14 = sshll.u32 %s1209_s19, 4  ;;  %s1124_s14 = int_to_ptr.vmem [resolvable:$false] %s1123_s14 }
  0x55   : > { %s1125_s21 = scalar_lea.vmem %s1124_s14, 1024  ;;  %p1126_p3 = scmp.lt.s32.totalorder %s1386_s10, %s1124_s14 }
  0x56   : > { %p1121_p11 = pnand %p1119_p8, %p1105_p0  ;;  %p1127_p7 = scmp.lt.s32.totalorder %s1125_s21, %s1118_s18 }
  0x58   : > { %p1122_p13 = pneg %p1121_p11  ;;  %p1128_p9 = por %p1127_p7, %p1126_p3 }
  0x5a   : > { %p1129_p12 = pnand %p1128_p9, %p1122_p13 }
  0x5c   : > { %1132 = shalt.err (!%p1129_p12)
}
  0x5d   : > { %s1534_s23 = smov 128   ;;  %p1535_p0 = scmp.ne.s32.totalorder %s1529_s9, 0 }
  0x5e   : > { %982 = dma.hbm_to_vmem [thread:$0]  (!%p1388_p10), %s1384_s11, 512, %s1386_s10, %s1392_s15, %s1534_s23, %s1534_s23, %s1208_s29  }
  0x5f   : > { %281 = sbr.rel (%p1535_p0) target bundleno = 784 (0x310), region = 48  ;;  %s1426_s20 = sand.u32 (!%p1535_p0), 1, %s1195_s25  }
  0x60   : > { %s765_s22 = sshll.u32 (!%p1535_p0), %s1426_s20, 5  ;;  %s284_s18 = scalar_lea.sflag (!%p1535_p0), [#allocation3], %s1426_s20 }
  0x61   : > { %s1432_s13 = scalar_lea.vmem (!%p1535_p0), [#allocation2], %s765_s22  ;;  %p1536_p5 = scmp.ne.s32.totalorder (!%p1535_p0), %s1527_s30, 0 }
  0x66   : > { %1178 = dma.done.wait (%p1536_p5), %s284_s18, 512  }
  0x67   : > { %1180 = vsyncadd (%p1536_p5), %s284_s18, 4294966784  ;;  %p1537_p10 = scmp.eq.s32.totalorder %s1274_s28, 0 }
  0x69   : > { %1182 = dma.done.wait (%p1537_p10), [#allocation6], 4096   ;;  %p1538_p1 = pmov %p1537_p10 }
  0x6a   : > { %v332_v0 = vld [vmem:[#allocation5] sm:$0xff]  ;;  %v333_v1 = vld [vmem:[#allocation5 + $0x8] sm:$0xff]  ;;  %v334_v2 = vld [vmem:[#allocation5 + $0x10] sm:$0xff]  ;;  %s325_s21 = scalar_lea.vmem [#allocation8], %s765_s22  ;;  %s779_s23 = sshll.u32 %s1274_s28, 9 }
  0x6b   : > { %1184 = vsyncadd (%p1538_p1), [#allocation6], 4294963200  ;;  %v896_v3 = vpack.c.bf16 %v333_v1, %v332_v0  ;;  %v335_v4 = vld [vmem:[#allocation5 + $0x18] sm:$0xff]  ;;  %v336_v6 = vld [vmem:[#allocation5 + $0x20] sm:$0xff]  ;;  %s664_s18 = sshll.u32 %s325_s21, 4  ;;  %s1470_s30 = scalar_lea.hbm %s1522_s7, %s779_s23  ;;  %s1472_s18 = int_to_ptr.vmem [resolvable:$true] %s664_s18 }
  0x6c   : > { %v900_v5 = vpack.c.bf16 %v335_v4, %v334_v2  ;;  %v337_v7 = vld [vmem:[#allocation5 + $0x28] sm:$0xff]  ;;  %v328_v9 = vld [vmem:[%s1432_s13] sm:$0xff]  ;;  %v338_v10 = vld [vmem:[#allocation5 + $0x30] sm:$0xff]  ;;  %s651_s9 = scalar_lea.sflag [#allocation4], %s1426_s20  ;;  %s1133_s29 = scalar_lea.vmem %s1472_s18, 512 }
  0x6d   : > { %897 = vmatprep.subr.bf16.mxu0 %v896_v3  ;;  %v904_v8 = vpack.c.bf16 %v337_v7, %v336_v6  ;;  %v339_v11 = vld [vmem:[#allocation5 + $0x38] sm:$0xff]  ;;  %852 = vmatprep.mubr.f32.mxu0 %v328_v9  ;;  %v460_v12 = vld [vmem:[#allocation7] sm:$0xff]  ;;  %v461_v13 = vld [vmem:[#allocation7 + $0x8] sm:$0xff]  ;;  %p1134_p2 = scmp.ne.s32.totalorder %s1472_s18, %s1133_s29  ;;  %s1210_s28 = smov [#allocation8]  }
  0x6e   : > { %899 = vmatpush3.bf16.msra.mxu0 %v896_v3  ;;  %v462_v14 = vld [vmem:[#allocation7 + $0x10] sm:$0xff]  ;;  %v463_v15 = vld [vmem:[#allocation7 + $0x18] sm:$0xff]  ;;  %v928_v16 = vpack.c.bf16 %v461_v13, %v460_v12  ;;  %v908_v18 = vpack.c.bf16 %v339_v11, %v338_v10  ;;  %v464_v19 = vld [vmem:[#allocation7 + $0x20] sm:$0xff]  ;;  %s1137_s11 = sshll.u32 %s1210_s28, 4  ;;  %s1138_s11 = int_to_ptr.vmem [resolvable:$false] %s1137_s11 }
  0x6f   : > { %901 = vmatprep.subr.bf16.mxu0 %v900_v5  ;;  %v932_v17 = vpack.c.bf16 %v463_v15, %v462_v14  ;;  %v465_v20 = vld [vmem:[#allocation7 + $0x28] sm:$0xff]  ;;  %v340_v21 = vld [vmem:[#allocation5 + $0x40] sm:$0xff]  ;;  %v342_v25 = vld [vmem:[#allocation5 + $0x50] sm:$0xff]  ;;  %p1135_p4 = pnand %p1134_p2, %p1371_p6  ;;  %s1139_s10 = scalar_lea.vmem %s1138_s11, 1024 }
  0x70   : > { %v341_v22 = vld [vmem:[#allocation5 + $0x48] sm:$0xff]  ;;  %929 = vmatprep.subr.bf16.mxu1 %v928_v16  ;;  %v936_v23 = vpack.c.bf16 %v465_v20, %v464_v19  ;;  %v343_v26 = vld [vmem:[#allocation5 + $0x58] sm:$0xff]  ;;  %v344_v28 = vld [vmem:[#allocation5 + $0x60] sm:$0xff]  ;;  %p1140_p11 = scmp.lt.s32.totalorder %s1472_s18, %s1138_s11  ;;  %p1141_p13 = scmp.lt.s32.totalorder %s1139_s10, %s1133_s29 }
  0x71   : > { %931 = vmatpush3.bf16.msra.mxu1 %v928_v16  ;;  %v912_v24 = vpack.c.bf16 %v341_v22, %v340_v21  ;;  %v916_v27 = vpack.c.bf16 %v343_v26, %v342_v25  ;;  %v345_v29 = vld [vmem:[#allocation5 + $0x68] sm:$0xff]  ;;  %v346_v31 = vld [vmem:[#allocation5 + $0x70] sm:$0xff]  ;;  %v347_v32 = vld [vmem:[#allocation5 + $0x78] sm:$0xff]  ;;  %p1136_p8 = pneg %p1135_p4 }
  0x72   : > { %903 = vmatpush3.bf16.msra.mxu0 %v900_v5  ;;  %933 = vmatprep.subr.bf16.mxu1 %v932_v17  ;;  %v920_v30 = vpack.c.bf16 %v345_v29, %v344_v28  ;;  %v924_v33 = vpack.c.bf16 %v347_v32, %v346_v31  ;;  %v329_v34 = vld [vmem:[%s1432_s13 + $0x8] sm:$0xff]  ;;  %v330_v35 = vld [vmem:[%s1432_s13 + $0x10] sm:$0xff]  ;;  %v331_v36 = vld [vmem:[%s1432_s13 + $0x18] sm:$0xff]  ;;  %p1142_p3 = por %p1141_p13, %p1140_p11 }
  0x73   : > { %905 = vmatprep.subr.bf16.mxu0 %v904_v8  ;;  %v466_v37 = vld [vmem:[#allocation7 + $0x30] sm:$0xff]  ;;  %v467_v38 = vld [vmem:[#allocation7 + $0x38] sm:$0xff]  ;;  %v468_v40 = vld [vmem:[#allocation7 + $0x40] sm:$0xff] }
  0x74   : > { %v940_v39 = vpack.c.bf16 %v467_v38, %v466_v37  ;;  %v469_v41 = vld [vmem:[#allocation7 + $0x48] sm:$0xff]  ;;  %v470_v43 = vld [vmem:[#allocation7 + $0x50] sm:$0xff]  ;;  %v471_v44 = vld [vmem:[#allocation7 + $0x58] sm:$0xff]  ;;  %p1143_p7 = pnand %p1142_p3, %p1136_p8 }
  0x75   : > { %935 = vmatpush3.bf16.msra.mxu1 %v932_v17  ;;  %v944_v42 = vpack.c.bf16 %v469_v41, %v468_v40  ;;  %v948_v45 = vpack.c.bf16 %v471_v44, %v470_v43  ;;  %v472_v46 = vld [vmem:[#allocation7 + $0x60] sm:$0xff]  ;;  %v473_v47 = vld [vmem:[#allocation7 + $0x68] sm:$0xff]  ;;  %v474_v48 = vld [vmem:[#allocation7 + $0x70] sm:$0xff] }
  0x76   : > { %907 = vmatpush3.bf16.msra.mxu0 %v904_v8  ;;  %937 = vmatprep.subr.bf16.mxu1 %v936_v23  ;;  %v952_v49 = vpack.c.bf16 %v473_v47, %v472_v46  ;;  %v475_v50 = vld [vmem:[#allocation7 + $0x78] sm:$0xff]  ;;  %v769_v52 = vld [vmem:[%s1517_s2] ss:$0 sm:$0xff] }
  0x77   : > { %909 = vmatprep.subr.bf16.mxu0 %v908_v18  ;;  %v956_v51 = vpack.c.bf16 %v475_v50, %v474_v48  ;;  %v770_v17 = vld [vmem:[%s1519_s4] ss:$0 sm:$0xff] }
  0x79   : > { %939 = vmatpush3.bf16.msra.mxu1 %v936_v23 }
  0x7a   : > { %911 = vmatpush3.bf16.msra.mxu0 %v908_v18  ;;  %941 = vmatprep.subr.bf16.mxu1 %v940_v39 }
  0x7b   : > { %913 = vmatprep.subr.bf16.mxu0 %v912_v24 }
  0x7d   : > { %943 = vmatpush3.bf16.msra.mxu1 %v940_v39 }
  0x7e   : > { %915 = vmatpush3.bf16.msra.mxu0 %v912_v24  ;;  %945 = vmatprep.subr.bf16.mxu1 %v944_v42 }
  0x7f   : > { %917 = vmatprep.subr.bf16.mxu0 %v916_v27 }
  0x81   : > { %947 = vmatpush3.bf16.msra.mxu1 %v944_v42 }
  0x82   : > { %919 = vmatpush3.bf16.msra.mxu0 %v916_v27  ;;  %949 = vmatprep.subr.bf16.mxu1 %v948_v45 }
  0x83   : > { %921 = vmatprep.subr.bf16.mxu0 %v920_v30 }
  0x85   : > { %951 = vmatpush3.bf16.msra.mxu1 %v948_v45 }
  0x86   : > { %923 = vmatpush3.bf16.msra.mxu0 %v920_v30  ;;  %953 = vmatprep.subr.bf16.mxu1 %v952_v49 }
  0x87   : > { %925 = vmatprep.subr.bf16.mxu0 %v924_v33 }
  0x89   : > { %955 = vmatpush3.bf16.msra.mxu1 %v952_v49 }
  0x8a   : > { %927 = vmatpush3.bf16.msra.mxu0 %v924_v33  ;;  %957 = vmatprep.subr.bf16.mxu1 %v956_v51 }
  0x8d   : > { %853 = vmatmul.mubr.f32.vlgmr.msra.gmra.mrb[0].mxu0 %v329_v34  ;;  %959 = vmatpush3.bf16.msra.mxu1 %v956_v51 }
  0x8e   : > { %855 = vmatprep.mubr.f32.mxu0 %v330_v35 }
  0x91   : > { %856 = vmatmul.mubr.f32.gmra.mrb[2].mxu0 %v331_v36 }
 0x160   : > { %v854_v53 = vpop.f32.mrb[0].mxu0 }
 0x161   : > { %v427_v54 = vadd.f32 %v854_v53, %v769_v52  ;;  %v421_v55 = vpop.f32.mrb[1].mxu0 }
 0x162   : > { %v422_v56 = vadd.f32 %v769_v52, %v421_v55 }
 0x163   : > { %v445_v57 = vmul.f32 0.70710677, %v427_v54  ;;  %v441_v6 = vmul.f32 0.5, %v427_v54 }
 0x164   : > { %v444_v58 = vmul.f32 0.70710677, %v422_v56  ;;  %v857_v59 = vpop.f32.mrb[2].mxu0  ;;  %v440_v4 = vmul.f32 0.5, %v422_v56 }
 0x165   : > { %1031 = verf.f32 %v445_v57  ;;  %v437_v60 = vadd.f32 %v857_v59, %v769_v52  ;;  %v431_v61 = vpop.f32.mrb[3].mxu0 }
 0x166   : > { %v432_v62 = vadd.f32 %v769_v52, %v431_v61  ;;  %1033 = verf.f32 %v444_v58 }
 0x167   : > { %v447_v63 = vmul.f32 0.70710677, %v437_v60  ;;  %v443_v14 = vmul.f32 0.5, %v437_v60 }
 0x168   : > { %v446_v0 = vmul.f32 0.70710677, %v432_v62  ;;  %v442_v12 = vmul.f32 0.5, %v432_v62 }
 0x169   : > { %1035 = verf.f32 %v447_v63  ;;  %v771_v63 = vld [vmem:[%s1520_s5] ss:$0 sm:$0xff] }
 0x16a   : > { %1037 = verf.f32 %v446_v0 }
 0x16f   : > { %v1032_v1 = vpop.eup %1031 }
 0x170   : > { %v1034_v2 = vpop.eup %1033  ;;  %v453_v3 = vadd.f32 1.0, %v1032_v1 }
 0x171   : > { %v452_v5 = vadd.f32 1.0, %v1034_v2  ;;  %v772_v2 = vld [vmem:[%s1521_s6] ss:$0 sm:$0xff] }
 0x172   : > { %v457_v10 = vmul.f32 %v453_v3, %v441_v6 }
 0x173   : > { %v1036_v7 = vpop.eup %1035  ;;  %v456_v8 = vmul.f32 %v452_v5, %v440_v4 }
 0x174   : > { %v1038_v9 = vpop.eup %1037  ;;  %v455_v11 = vadd.f32 1.0, %v1036_v7 }
 0x175   : > { %890 = vmatprep.mubr.f32.mxu1 %v456_v8  ;;  %v454_v13 = vadd.f32 1.0, %v1038_v9 }
 0x176   : > { %891 = vmatmul.mubr.f32.vlgmr.msra.gmra.mrb[0].mxu1 %v457_v10  ;;  %v459_v16 = vmul.f32 %v455_v11, %v443_v14 }
 0x177   : > { %v458_v15 = vmul.f32 %v454_v13, %v442_v12 }
 0x179   : > { %893 = vmatprep.mubr.f32.mxu1 %v458_v15 }
 0x17a   : > { %894 = vmatmul.mubr.f32.gmra.mrb[2].mxu1 %v459_v16 }
 0x249   : > { %v892_v18 = vpop.f32.mrb[0].mxu1 }
 0x24a   : > { %v555_v19 = vadd.f32 %v892_v18, %v770_v17  ;;  %v549_v20 = vpop.f32.mrb[1].mxu1 }
 0x24b   : > { %v550_v22 = vadd.f32 %v770_v17, %v549_v20 }
 0x24c   : > { %v569_v21 = vadd.f32 %v555_v19, %v427_v54 }
 0x24d   : > { %v895_v23 = vpop.f32.mrb[2].mxu1  ;;  %v568_v27 = vadd.f32 %v550_v22, %v422_v56 }
 0x24e   : > { %v565_v24 = vadd.f32 %v895_v23, %v770_v17  ;;  %574 = vadd.xlane.f32.xlu0 %v569_v21  ;;  %v559_v25 = vpop.f32.mrb[3].mxu1  ;;  %v581_v26 = vmul.f32 %v569_v21, %v569_v21 }
 0x24f   : > { %v560_v28 = vadd.f32 %v770_v17, %v559_v25  ;;  %v580_v31 = vmul.f32 %v568_v27, %v568_v27 }
 0x250   : > { %586 = vadd.xlane.f32.xlu1 %v581_v26  ;;  %v1452_v29 = vadd.f32 %v565_v24, %v437_v60 }
 0x251   : > { %v570_v30 = vadd.f32 %v560_v28, %v432_v62 }
 0x252   : > { %572 = vadd.xlane.f32.xlu0 %v568_v27  ;;  %v583_v33 = vmul.f32 %v1452_v29, %v1452_v29 }
 0x253   : > { %v582_v32 = vmul.f32 %v570_v30, %v570_v30 }
 0x254   : > { %578 = vadd.xlane.f32.xlu1 %v1452_v29 }
 0x256   : > { %584 = vadd.xlane.f32.xlu0 %v580_v31 }
 0x258   : > { %576 = vadd.xlane.f32.xlu1 %v570_v30 }
 0x25a   : > { %588 = vadd.xlane.f32.xlu0 %v582_v32 }
 0x25c   : > { %590 = vadd.xlane.f32.xlu1 %v583_v33 }
 0x2db   : > { %v575_v34 = vpop.xlane.xlu0 %574 }
 0x2dc   : > { %v593_v35 = vmul.f32 0.03125, %v575_v34 }
 0x2dd   : > { %v587_v36 = vpop.xlane.xlu1 %586 }
 0x2de   : > { %v601_v37 = vmul.f32 %v593_v35, %v593_v35  ;;  %v597_v38 = vmul.f32 0.03125, %v587_v36  ;;  %v609_v61 = vsub.f32 %v569_v21, %v593_v35 }
 0x2df   : > { %v573_v39 = vpop.xlane.xlu0 %572 }
 0x2e0   : > { %v605_v40 = vsub.f32 %v597_v38, %v601_v37  ;;  %v592_v41 = vmul.f32 0.03125, %v573_v39 }
 0x2e1   : > { %v579_v42 = vpop.xlane.xlu1 %578 }
 0x2e2   : > { %v613_v43 = vadd.f32 1e-05, %v605_v40  ;;  %v600_v45 = vmul.f32 %v592_v41, %v592_v41  ;;  %v595_v48 = vmul.f32 0.03125, %v579_v42  ;;  %v608_v5 = vsub.f32 %v568_v27, %v592_v41 }
 0x2e3   : > { %v585_v44 = vpop.xlane.xlu0 %584 }
 0x2e4   : > { %1039 = vrsqrt.f32 %v613_v43  ;;  %v596_v46 = vmul.f32 0.03125, %v585_v44  ;;  %v603_v56 = vmul.f32 %v595_v48, %v595_v48  ;;  %v611_v11 = vsub.f32 %v1452_v29, %v595_v48 }
 0x2e5   : > { %v577_v47 = vpop.xlane.xlu1 %576 }
 0x2e6   : > { %v604_v49 = vsub.f32 %v596_v46, %v600_v45  ;;  %v594_v50 = vmul.f32 0.03125, %v577_v47 }
 0x2e7   : > { %v589_v51 = vpop.xlane.xlu0 %588 }
 0x2e8   : > { %v612_v52 = vadd.f32 1e-05, %v604_v49  ;;  %v602_v53 = vmul.f32 %v594_v50, %v594_v50  ;;  %v598_v54 = vmul.f32 0.03125, %v589_v51  ;;  %v610_v9 = vsub.f32 %v570_v30, %v594_v50 }
 0x2e9   : > { %v591_v55 = vpop.xlane.xlu1 %590 }
 0x2ea   : > { %1041 = vrsqrt.f32 %v612_v52  ;;  %v606_v57 = vsub.f32 %v598_v54, %v602_v53  ;;  %v599_v58 = vmul.f32 0.03125, %v591_v55 }
 0x2ec   : > { %v614_v59 = vadd.f32 1e-05, %v606_v57  ;;  %v607_v60 = vsub.f32 %v599_v58, %v603_v56 }
 0x2ee   : > { %v1040_v62 = vpop.eup %1039  ;;  %1043 = vrsqrt.f32 %v614_v59  ;;  %v615_v0 = vadd.f32 1e-05, %v607_v60 }
 0x2ef   : > { %v621_v1 = vmul.f32 %v1040_v62, %v609_v61 }
 0x2f0   : > { %1045 = vrsqrt.f32 %v615_v0 }
 0x2f1   : > { %v632_v3 = vmul.f32 %v771_v63, %v621_v1 }
 0x2f3   : > { %v643_v4 = vadd.f32 %v772_v2, %v632_v3 }
 0x2f4   : > { %v1042_v6 = vpop.eup %1041 }
 0x2f5   : > { %647 = vst [vmem:[%s325_s21 + $0x8] sm:$0xff] %v643_v4  ;;  %v620_v7 = vmul.f32 %v1042_v6, %v608_v5 }
 0x2f7   : > { %v631_v8 = vmul.f32 %v771_v63, %v620_v7 }
 0x2f8   : > { %v1044_v10 = vpop.eup %1043 }
 0x2f9   : > { %v642_v12 = vadd.f32 %v772_v2, %v631_v8  ;;  %v622_v13 = vmul.f32 %v1044_v10, %v610_v9 }
 0x2fa   : > { %v1046_v14 = vpop.eup %1045 }
 0x2fb   : > { %646 = vst [vmem:[%s325_s21] sm:$0xff] %v642_v12  ;;  %v633_v15 = vmul.f32 %v771_v63, %v622_v13  ;;  %v623_v16 = vmul.f32 %v1046_v14, %v611_v11 }
 0x2fd   : > { %v644_v17 = vadd.f32 %v772_v2, %v633_v15  ;;  %v634_v18 = vmul.f32 %v771_v63, %v623_v16 }
 0x2ff   : > { %648 = vst [vmem:[%s325_s21 + $0x10] sm:$0xff] %v644_v17  ;;  %v645_v19 = vadd.f32 %v772_v2, %v634_v18 }
 0x301   : > { %649 = vst [vmem:[%s325_s21 + $0x18] sm:$0xff] %v645_v19 }
 0x302   : > { %1146 = shalt.err (!%p1143_p7)
}
 0x303   : > { %s1147_s15 = scalar_lea.hbm %s1470_s30, 512  ;;  %s1151_s21 = scalar_lea.hbm %s1522_s7, 2048 }
 0x304   : > { %p1148_p9 = scmp.ne.s32.totalorder %s1470_s30, %s1147_s15  ;;  %p1152_p5 = scmp.lt.u32.totalorder %s1470_s30, %s1522_s7 }
 0x305   : > { %p1153_p10 = scmp.lt.u32.totalorder %s1151_s21, %s1147_s15  ;;  %p1155_p2 = scmp.lt.u32.totalorder %s1147_s15, %s1470_s30 }
 0x306   : > { %p1149_p12 = pnand %p1148_p9, %p1371_p6 }
 0x307   : > { %p1154_p1 = por %p1153_p10, %p1152_p5 }
 0x308   : > { %p1150_p0 = pneg %p1149_p12 }
 0x309   : > { %p1156_p4 = por %p1155_p2, %p1154_p1 }
 0x30b   : > { %p1157_p8 = pnand %p1156_p4, %p1150_p0 }
 0x30d   : > { %1160 = shalt.err (!%p1157_p8)
}
 0x30e   : > { %s1211_s13 = smov 128   ;;  %s1212_s29 = smov 8  }
 0x30f   : > { %970 = dma.vmem_to_hbm [thread:$0]  (%p1371_p6), %s1472_s18, 512, %s1470_s30, %s651_s9, %s1211_s13, %s1211_s13, %s1212_s29  }
 0x310 PF: > { %p992_p11 = scmp.ge.s32.totalorder %s1203_s27, 2  ;;  %s679_s28 = sand.u32 1, %s1191_s24  }
 0x311   : > { %p1539_p13 = scmp.ne.s32.totalorder %s1528_s8, 0  ;;  %s680_s11 = scalar_lea.sflag [#allocation4], %s679_s28 }
 0x313   : > { %p984_p3 = pnand %p992_p11, %p1539_p13 }
 0x315   : > { %1186 = dma.done.wait (!%p984_p3), %s680_s11, 512  }
 0x316   : > { %1188 = vsyncadd (!%p984_p3), %s680_s11, 4294966784  ;;  %p21_p7 = scmp.ge.s32.totalorder %s1361_s12, 6   ;;  %s1540_s24 = smov %s1195_s25 }
 0x317   : > { %s1541_s25 = smov %s1199_s26  ;;  %s1542_s26 = smov %s1377_s17 }
 0x318   : > { %s1543_s27 = smov %s1361_s12  ;;  %23 = sbr.rel (!%p21_p7) target bundleno = 6 (0x6), region = 101 }
 0x31f   :  { %685 = vsyncpa [#allocation3], 1 }
 0x320   :  { %687 = vsyncpa [#allocation3 + $0x1], 1 }
 0x321   :  { %688 = vsyncpa [#allocation6], 1 }
 0x322   :  { %689 = vsyncpa [#allocation4], 1 }
 0x323   :  { %691 = vsyncpa [#allocation4 + $0x1], 1 }

</bundles_post_ra>
